<compile_context>
chip_gen: v5e
topology: v5e:2x2
jax: 0.10.0
libtpu: 0.0.40
codegen_flags: <defaults>
</compile_context>

<pallas_src>
import functools

import jax
import jax.numpy as jnp
from jax.experimental import pallas as pl
from jax.experimental.pallas import tpu as pltpu


def _round_up(x, m):
    return (x + m - 1) // m * m


def _pick_divisor_tile(total, preferred, quantum):
    """Largest multiple of `quantum` that is <= preferred and divides `total`."""
    if total <= preferred:
        return total
    t = max((preferred // quantum) * quantum, quantum)
    while t > quantum and total % t != 0:
        t -= quantum
    return t


def _vmem_capacity_bytes():
    """Generation-aware VMEM capacity (128 MiB v5e/v6e, 64 MiB per-TC v7x)."""
    try:
        info = pltpu.get_tpu_info()
        cap = getattr(info, "vmem_capacity_bytes", None)
        if cap:
            return int(cap)
    except Exception:
        pass
    return 64 * 1024 * 1024  # conservative default (v7x per-TC VMEM)


def prepare_params(weight, bias):
    """One-time prep of PyTorch-convention params: weight (H_out, H_in), bias (H_out,).

    Returns (w_io, b_row): (Kp, Np) bf16 transposed weight and (1, Np) f32 bias,
    both padded to multiples of 128.  Call once and reuse across forward calls.
    """
    h_out, h_in = weight.shape
    kp = _round_up(h_in, 128)
    np_ = _round_up(h_out, 128)
    w_io = weight.T.astype(jnp.bfloat16)
    if (h_in, h_out) != (kp, np_):
        w_io = jnp.pad(w_io, ((0, kp - h_in), (0, np_ - h_out)))
    b_row = bias.astype(jnp.float32).reshape(1, h_out)
    if h_out != np_:
        b_row = jnp.pad(b_row, ((0, 0), (0, np_ - h_out)))
    return w_io, b_row


def _mlp_kernel(*refs, dropout_rate, apply_dropout, k_tiled):
    """dense -> dropout -> tanh for one (output-column tile, token tile[, K tile])."""
    if apply_dropout:
        x_ref, w_ref, b_ref, bits_ref = refs[:4]
        rest = refs[4:]
    else:
        x_ref, w_ref, b_ref = refs[:3]
        bits_ref = None
        rest = refs[3:]
    o_ref = rest[0]
    acc_ref = rest[1] if len(rest) > 1 else None

    # In-kernel cast to bf16 (VPU) -> MXU matmul with f32 accumulation.
    x = x_ref[...].astype(jnp.bfloat16)
    part = jnp.dot(x, w_ref[...], preferred_element_type=jnp.float32)

    def epilogue(y):
        y = y + b_ref[...]
        if apply_dropout:
            # Inverted dropout (same semantics as nn.Dropout in train mode).
            thresh = jnp.uint32(min(int(dropout_rate * 4294967296.0), 4294967295))
            inv_keep = jnp.float32(1.0 / (1.0 - dropout_rate))
            y = jnp.where(bits_ref[...] >= thresh, y * inv_keep, jnp.float32(0.0))
        o_ref[...] = jnp.tanh(y).astype(o_ref.dtype)

    if not k_tiled:
        epilogue(part)
    else:
        k = pl.program_id(2)

        @pl.when(k == 0)
        def _():
            acc_ref[...] = part

        @pl.when(k != 0)
        def _():
            acc_ref[...] = acc_ref[...] + part

        @pl.when(k == pl.num_programs(2) - 1)
        def _():
            epilogue(acc_ref[...])


def mlp_layer(features, w_io, b_row, *, dropout_rate=0.1, training=False,
              rng_key=None, out_dtype=None):
    """features: (..., H).  w_io/b_row: outputs of prepare_params()."""
    assert 0.0 <= dropout_rate <= 1.0
    orig_shape = features.shape
    H = orig_shape[-1]
    out_dtype = features.dtype if out_dtype is None else out_dtype
    Kp, Np = w_io.shape
    assert Kp >= H and Np >= H

    if training and dropout_rate >= 1.0:
        # Everything dropped -> dense output is 0 -> tanh(0) == 0.  Avoids 1/(1-p) inf.
        return jnp.zeros(orig_shape, out_dtype)

    use_bits = training and dropout_rate > 0.0
    if use_bits and rng_key is None:
        rng_key = jax.random.PRNGKey(0)

    x2d = features.reshape(-1, H)
    T = x2d.shape[0]
    x_item = jnp.dtype(x2d.dtype).itemsize
    out_item = jnp.dtype(out_dtype).itemsize

    # ---- generation-aware tile selection --------------------------------------
    vmem_cap = _vmem_capacity_bytes()
    budget = int(vmem_cap * 0.70)

    def est(tt, tn, tk, resident, k_tiled):
        wb = 1 if resident else 2
        e = 2 * tt * tk * x_item            # x tiles (double-buffered, original dtype)
        e += wb * tk * tn * 2               # weight tile(s), bf16
        e += wb * 8 * tn * 4                # bias tile(s), f32 (8-sublane padded)
        e += 2 * tt * tn * out_item         # out tiles
        if use_bits:
            e += 2 * tt * tn * 4            # dropout-bit tiles
        if k_tiled:
            e += tt * tn * 4                # f32 accumulator scratch
        return e

    # Prefer the whole padded weight resident in VMEM with a large token tile.
    tile_t = min(512, _round_up(T, 16))
    tile_n, tile_k = Np, Kp
    # 1) shrink the token tile first (keeps the weight read-once from HBM).
    while est(tile_t, tile_n, tile_k, True, False) > budget and tile_t > 64:
        tile_t = max(64, _round_up(tile_t // 2, 16))
    # 2) weight does not fit resident -> tile the output columns.
    if est(tile_t, tile_n, tile_k, True, False) > budget:
        tile_n = _pick_divisor_tile(Np, 512, 128)
        while est(tile_t, tile_n, tile_k, False, False) > budget and tile_n > 128:
            tile_n = _pick_divisor_tile(Np, max(tile_n // 2, 128), 128)
    # 3) K-resident block still too big (huge hidden on v7x's 64 MiB VMEM) -> tile K.
    if est(tile_t, tile_n, tile_k, tile_n == Np, False) > budget:
        tile_k = _pick_divisor_tile(Kp, 2048, 128)
        while est(tile_t, tile_n, tile_k, False, True) > budget and tile_k > 128:
            tile_k = _pick_divisor_tile(Kp, max(tile_k // 2, 128), 128)

    Tp = _round_up(T, tile_t)
    n_t, n_n, n_k = Tp // tile_t, Np // tile_n, Kp // tile_k
    weight_resident = (n_n == 1 and n_k == 1)

    # ---- host-side padding (only when actually needed) ------------------------
    x_p = x2d if (T, H) == (Tp, Kp) else jnp.pad(x2d, ((0, Tp - T), (0, Kp - H)))
    inputs = [x_p, w_io, b_row]
    if use_bits:
        inputs.append(jax.random.bits(rng_key, (Tp, Np), dtype=jnp.uint32))

    # ---- grid & specs: token axis innermost so the weight tile is revisited ----
    if n_k == 1:
        grid = (n_n, n_t)
        dims = ("parallel", "parallel")
        pm = dict(pipeline_mode=pl.Buffered(1)) if weight_resident else {}
        x_spec = pl.BlockSpec((tile_t, Kp), lambda j, i: (i, 0))
        w_spec = pl.BlockSpec((Kp, tile_n), lambda j, i: (0, j), **pm)
        b_spec = pl.BlockSpec((1, tile_n), lambda j, i: (0, j), **pm)
        bits_spec = pl.BlockSpec((tile_t, tile_n), lambda j, i: (i, j))
        o_spec = pl.BlockSpec((tile_t, tile_n), lambda j, i: (i, j))
        scratch = []
    else:
        grid = (n_n, n_t, n_k)
        dims = ("parallel", "parallel", "arbitrary")
        x_spec = pl.BlockSpec((tile_t, tile_k), lambda j, i, k: (i, k))
        w_spec = pl.BlockSpec((tile_k, tile_n), lambda j, i, k: (k, j))
        b_spec = pl.BlockSpec((1, tile_n), lambda j, i, k: (0, j))
        bits_spec = pl.BlockSpec((tile_t, tile_n), lambda j, i, k: (i, j))
        o_spec = pl.BlockSpec((tile_t, tile_n), lambda j, i, k: (i, j))
        scratch = [pltpu.VMEM((tile_t, tile_n), jnp.float32)]

    in_specs = [x_spec, w_spec, b_spec] + ([bits_spec] if use_bits else [])

    # Explicit VMEM budget with a device-aware ceiling (no over-request on v7x).
    vmem_est = est(tile_t, tile_n, tile_k, weight_resident, n_k > 1)
    vmem_limit = int(min(max(vmem_est * 3 // 2, 32 * 1024 * 1024), vmem_cap * 0.9))

    cost = pl.CostEstimate(
        flops=2 * T * H * H,
        transcendentals=T * H,
        bytes_accessed=int(T * H * x_item + Kp * Np * 2 + Np * 4 + T * H * out_item
                           + (Tp * Np * 4 if use_bits else 0)),
    )

    kernel = functools.partial(_mlp_kernel, dropout_rate=float(dropout_rate),
                               apply_dropout=use_bits, k_tiled=(n_k > 1))

    out2d = pl.pallas_call(
        kernel,
        out_shape=jax.ShapeDtypeStruct((Tp, Np), out_dtype),
        grid_spec=pltpu.PrefetchScalarGridSpec(
            num_scalar_prefetch=0,
            grid=grid,
            in_specs=in_specs,
            out_specs=o_spec,
            scratch_shapes=scratch,
        ),
        compiler_params=pltpu.CompilerParams(
            dimension_semantics=dims,
            vmem_limit_bytes=vmem_limit,
        ),
        cost_estimate=cost,
    )(*inputs)

    return out2d[:T, :H].reshape(orig_shape)


if __name__ == "__main__":
    # Small config consistent with the module: batch=2, seq=8, hidden=32.
    batch, seq, hidden = 2, 8, 32
    key = jax.random.PRNGKey(0)
    kx, kw, kb, kd = jax.random.split(key, 4)

    features = jax.random.normal(kx, (batch, seq, hidden), dtype=jnp.float32)
    # PyTorch Linear shapes: weight (H_out, H_in), bias (H,)
    weight = jax.random.normal(kw, (hidden, hidden), dtype=jnp.float32) * (1.0 / hidden ** 0.5)
    bias = jax.random.normal(kb, (hidden,), dtype=jnp.float32) * 0.02

    # One-time param prep (transpose/cast/pad hoisted out of the per-call path).
    w_io, b_row = prepare_params(weight, bias)

    # Eval-mode forward (dropout is identity), matching module.eval() semantics.
    out = mlp_layer(features, w_io, b_row, dropout_rate=0.1, training=False)
    out = jax.block_until_ready(out)

    # Reference in matching precision (bf16 matmul inputs, f32 accumulate).
    xb = features.astype(jnp.bfloat16).astype(jnp.float32)
    wb = weight.astype(jnp.bfloat16).astype(jnp.float32)
    ref = jnp.tanh(xb @ wb.T + bias)
    assert out.shape == features.shape
    assert jnp.allclose(out, ref, atol=2e-3, rtol=2e-3), float(jnp.max(jnp.abs(out - ref)))

    # Training-mode forward (dropout active) — stochastic, so sanity checks only.
    out_tr = mlp_layer(features, w_io, b_row, dropout_rate=0.5, training=True, rng_key=kd)
    out_tr = jax.block_until_ready(out_tr)
    assert out_tr.shape == features.shape
    assert bool(jnp.all(jnp.isfinite(out_tr)))
    assert bool(jnp.all(jnp.abs(out_tr) <= 1.0))
    zero_frac = float(jnp.mean((out_tr == 0).astype(jnp.float32)))
    assert 0.2 < zero_frac < 0.8, zero_frac   # ~50% of elements dropped

    print("KERNEL_OK")
</pallas_src>

<mosaic_0001>
module attributes {stable_mosaic.version = 11 : i64} {
  func.func @_mlp_kernel(%arg0: i32, %arg1: i32, %arg2: memref<16x128xf32, #tpu.memory_space<vmem>>, %arg3: memref<128x128xbf16, #tpu.memory_space<vmem>>, %arg4: memref<1x128xf32, #tpu.memory_space<vmem>>, %arg5: memref<16x128xf32, #tpu.memory_space<vmem>>) attributes {dimension_semantics = [#tpu.dimension_semantics<parallel>, #tpu.dimension_semantics<parallel>], iteration_bounds = array<i64: 1, 1>, scalar_prefetch = 0 : i64, scratch_operands = 0 : i64, tpu.core_type = #tpu.core_type<tc>, window_params = [{transform_indices = @transform_0, window_bounds = array<i64: 16, 128>}, {pipeline_mode = #tpu.pipeline_mode<synchronous>, transform_indices = @transform_1, window_bounds = array<i64: 128, 128>}, {pipeline_mode = #tpu.pipeline_mode<synchronous>, transform_indices = @transform_2, window_bounds = array<i64: 1, 128>}, {transform_indices = @transform_3, window_bounds = array<i64: 16, 128>}]} {
    %c0 = arith.constant 0 : index
    %c0_0 = arith.constant 0 : index
    %0 = vector.load %arg2[%c0, %c0_0] : memref<16x128xf32, #tpu.memory_space<vmem>>, vector<16x128xf32>
    %1 = arith.truncf %0 : vector<16x128xf32> to vector<16x128xbf16>
    %c0_1 = arith.constant 0 : index
    %c0_2 = arith.constant 0 : index
    %2 = vector.load %arg3[%c0_1, %c0_2] : memref<128x128xbf16, #tpu.memory_space<vmem>>, vector<128x128xbf16>
    %cst = arith.constant dense<0.000000e+00> : vector<16x128xf32>
    %3 = tpu.matmul %1, %2, %cst {dimension_numbers = #tpu.dot_dimension_numbers<[1], [0], [0], [1], [0, 0, 1, 1], [], []>} : vector<16x128xbf16>, vector<128x128xbf16>, vector<16x128xf32> -> vector<16x128xf32>
    %c0_3 = arith.constant 0 : index
    %c0_4 = arith.constant 0 : index
    %4 = vector.load %arg4[%c0_3, %c0_4] : memref<1x128xf32, #tpu.memory_space<vmem>>, vector<1x128xf32>
    %5 = vector.broadcast %4 : vector<1x128xf32> to vector<16x128xf32>
    %6 = arith.addf %3, %5 : vector<16x128xf32>
    %7 = math.tanh %6 : vector<16x128xf32>
    %c0_5 = arith.constant 0 : index
    %c0_6 = arith.constant 0 : index
    %8 = vector.load %arg5[%c0_5, %c0_6] : memref<16x128xf32, #tpu.memory_space<vmem>>, vector<16x128xf32>
    tpu.vector_store %arg5[%c0_5, %c0_6], %7 {strides = array<i32>} : memref<16x128xf32, #tpu.memory_space<vmem>>, vector<16x128xf32>,
    return
  }
  func.func @transform_0(%arg0: i32, %arg1: i32) -> (i32, i32) {
    %c0_i32 = arith.constant 0 : i32
    %c0_i32_0 = arith.constant 0 : i32
    return %arg1, %c0_i32 : i32, i32
  }
  func.func @transform_1(%arg0: i32, %arg1: i32) -> (i32, i32) {
    %c0_i32 = arith.constant 0 : i32
    %c0_i32_0 = arith.constant 0 : i32
    return %c0_i32, %arg0 : i32, i32
  }
  func.func @transform_2(%arg0: i32, %arg1: i32) -> (i32, i32) {
    %c0_i32 = arith.constant 0 : i32
    %c0_i32_0 = arith.constant 0 : i32
    return %c0_i32, %arg0 : i32, i32
  }
  func.func @transform_3(%arg0: i32, %arg1: i32) -> (i32, i32) {
    %c0_i32 = arith.constant 0 : i32
    return %arg1, %arg0 : i32, i32
  }
}

</mosaic_0001>

<bundles_post_ra>
// kernel: tpu_custom_call.1
= control target key start
LH: loop header
LB: loop body
LE: loop exit
PB: predicated region body
PF: predicated region fallthrough
CT: control target
= control target key end

     0   :  { %8 = vsyncpa [#allocation3], 0  ;;  %s331_s0 = inlined_call_operand.hbm [shape: f32[16,128], index: 0, kind: input, shape index: {}]   ;;  %s332_s1 = inlined_call_operand.hbm [shape: bf16[128,128], index: 1, kind: input, shape index: {}]   ;;  %s333_s2 = inlined_call_operand.vmem [shape: f32[1,128], index: 2, kind: input, shape index: {}]   ;;  %s334_s3 = inlined_call_operand.hbm [shape: f32[16,128], index: 3, kind: output, shape index: {}]  }
   0x1   :  { %9 = vsyncpa [#allocation6], 0 }
   0x2   :  { %10 = vsyncpa [#allocation4], 0  ;;  %s15_s14 = sshll.u32 %s331_s0, 4  ;;  %s286_s15 = smov [#allocation2]   ;;  %s16_s14 = int_to_ptr.hbm [resolvable:$true] %s15_s14 }
   0x3   :  { %s17_s16 = sshll.u32 %s286_s15, 4  ;;  %s28_s19 = sshll.u32 %s332_s1, 4  ;;  %s18_s16 = int_to_ptr.vmem [resolvable:$true] %s17_s16  ;;  %s29_s19 = int_to_ptr.hbm [resolvable:$true] %s28_s19 }
   0x4   :  { %s287_s20 = smov 128   ;;  %s288_s21 = smov 8  }
   0x5   :  { %23 = dma.hbm_to_vmem [thread:$0]  %s16_s14, 256, %s18_s16, [#allocation3], %s287_s20, %s287_s20, %s288_s21  }
   0x6   :  { %s289_s22 = smov [#allocation5]   ;;  %s290_s24 = smov 64  }
   0x7   :  { %s30_s23 = sshll.u32 %s289_s22, 4  ;;  %s291_s0 = smov 4   ;;  %s31_s23 = int_to_ptr.vmem [resolvable:$true] %s30_s23 }
   0x8   :  { %36 = dma.hbm_to_vmem [thread:$0]  %s29_s19, 1024, %s31_s23, [#allocation6], %s290_s24, %s290_s24, %s291_s0  }
   0x9   :  { %280 = dma.done.wait [#allocation3], 256  }
   0xa   :  { %281 = vsyncadd [#allocation3], 4294967040 }
   0xb   :  { %282 = dma.done.wait [#allocation6], 1024  }
   0xc   :  { %283 = vsyncadd [#allocation6], 4294966272  ;;  %v195_v0 = vld [vmem:[#allocation5 + $0x38] sm:$0xff]  ;;  %v194_v1 = vld [vmem:[#allocation5 + $0x30] sm:$0xff]  ;;  %s292_s26 = smov [#allocation7]   ;;  %s142_s30 = sshll.u32 %s334_s3, 4  ;;  %s143_s30 = int_to_ptr.hbm [resolvable:$true] %s142_s30 }
   0xd   :  { %118 = vmatpush.bf16.msra.mxu0 %v195_v0  ;;  %v193_v2 = vld [vmem:[#allocation5 + $0x28] sm:$0xff]  ;;  %v192_v3 = vld [vmem:[#allocation5 + $0x20] sm:$0xff]  ;;  %v191_v4 = vld [vmem:[#allocation5 + $0x18] sm:$0xff]  ;;  %s140_s27 = sshll.u32 %s292_s26, 4  ;;  %s141_s27 = int_to_ptr.vmem [resolvable:$true] %s140_s27 }
   0xe   :  { %v190_v5 = vld [vmem:[#allocation5 + $0x10] sm:$0xff]  ;;  %v189_v6 = vld [vmem:[#allocation5 + $0x8] sm:$0xff]  ;;  %v188_v7 = vld [vmem:[#allocation5] sm:$0xff] }
   0xf   :  { %v47_v8 = vld [vmem:[#allocation2] sm:$0xff]  ;;  %v48_v9 = vld [vmem:[#allocation2 + $0x8] sm:$0xff] }
  0x10   :  { %v49_v10 = vpack.c.bf16 %v48_v9, %v47_v8  ;;  %v203_v11 = vld [vmem:[%s333_s2] ss:$0 sm:$0xff] }
  0x11   :  { %119 = vmatpush.bf16.msra.mxu0 %v194_v1 }
  0x15   :  { %120 = vmatpush.bf16.msra.mxu0 %v193_v2 }
  0x19   :  { %121 = vmatpush.bf16.msra.mxu0 %v192_v3 }
  0x1d   :  { %122 = vmatpush.bf16.msra.mxu0 %v191_v4 }
  0x21   :  { %123 = vmatpush.bf16.msra.mxu0 %v190_v5 }
  0x25   :  { %124 = vmatpush.bf16.msra.mxu0 %v189_v6 }
  0x29   :  { %125 = vmatpush.bf16.msra.mxu0 %v188_v7 }
  0x2c   :  { %126 = vmatmul.bf16.vlgmr.msra.gmra.mxu0 %v49_v10 }
  0xa9   :  { %v127_v12 = vpop.f32.mrf.mxu0 }
  0xaa   :  { %v128_v13 = vadd.f32 %v203_v11, %v127_v12 }
  0xac   :  { %204 = vtanh.f32 %v128_v13 }
  0xb1   :  { %v129_v14 = vpop.f32.mrf.mxu0 }
  0xb2   :  { %v205_v15 = vpop.eup %204  ;;  %v130_v16 = vadd.f32 %v203_v11, %v129_v14 }
  0xb3   :  { %134 = vst [vmem:[#allocation7] sm:$0xff] %v205_v15 }
  0xb4   :  { %206 = vtanh.f32 %v130_v16 }
  0xba   :  { %v207_v17 = vpop.eup %206 }
  0xbb   :  { %135 = vst [vmem:[#allocation7 + $0x8] sm:$0xff] %v207_v17 }
  0xbc   :  { %148 = dma.vmem_to_hbm [thread:$0]  %s141_s27, 256, %s143_s30, [#allocation4], %s287_s20, %s287_s20, %s288_s21  }
  0xbd   :  { %284 = dma.done.wait [#allocation4], 256  }
  0xbe   :  { %285 = vsyncadd [#allocation4], 4294967040 }
  0xbf   :  { %153 = vsyncpa [#allocation3], 1 }
  0xc0   :  { %154 = vsyncpa [#allocation6], 1 }
  0xc1   :  { %155 = vsyncpa [#allocation4], 1 }

</bundles_post_ra>
